<compile_context>
chip_gen: v7x
topology: tpu7x:2x2x1
jax: 0.10.0
libtpu: 0.0.40
codegen_flags: <defaults>
</compile_context>

<pallas_src>
import functools

import jax
import jax.numpy as jnp
from jax.experimental import pallas as pl
from jax.experimental.pallas import tpu as pltpu


# ----------------------------- Pallas kernel -------------------------------


def _stable_sigmoid(x):
    # Numerically stable sigmoid: exp() only ever sees non-positive arguments.
    z = jnp.exp(-jnp.abs(x))
    return jnp.where(x >= 0, 1.0 / (1.0 + z), z / (1.0 + z))


def _gan_fused_kernel(z_ref, lab_ref, g_w1_ref, g_w2_ref, d_w_img_ref,
                      b_cols_ref, g_b2_ref, d_w2_ref, d_b2_ref, out_ref):
    """Fused generator+discriminator, 'features x batch' orientation."""
    g_b1 = b_cols_ref[:, 0:1]                     # (H, 1) f32
    d_b1 = b_cols_ref[:, 1:2]                     # (H, 1) f32

    # ----- Generator: z -> Linear -> ReLU -> Linear -> tanh -----
    h = jnp.dot(g_w1_ref[...], z_ref[...],        # (H,Z)@(Z,tb) bf16 -> f32
                preferred_element_type=jnp.float32)
    h = jnp.maximum(h + g_b1, 0.0)                                # ReLU (f32)
    img = jnp.dot(g_w2_ref[...], h.astype(jnp.bfloat16),          # (F,H)@(H,tb)
                  preferred_element_type=jnp.float32)
    img = jnp.tanh(img + g_b2_ref[...])                           # (F, tb) f32

    # ----- Discriminator -----
    # concat([img, emb]) @ W1 == W_img @ img + (W_lab @ emb[labels]); the label
    # half is pre-folded in the wrapper (discriminator is frozen) and streamed
    # per sample as a bf16 column that is just added here.
    d_h = (jnp.dot(d_w_img_ref[...], img.astype(jnp.bfloat16),
                   preferred_element_type=jnp.float32)
           + lab_ref[...].astype(jnp.float32)
           + d_b1)
    d_h = jnp.maximum(d_h, 0.2 * d_h)                             # LeakyReLU(0.2)

    # Width-1 head: (1,H)@(H,tb) -> lane-dense (1, tb) logits; scalar bias SMEM.
    logit = jnp.dot(d_w2_ref[...], d_h.astype(jnp.bfloat16),
                    preferred_element_type=jnp.float32) + d_b2_ref[0, 0]
    out_ref[...] = _stable_sigmoid(logit)                         # (1, tb)


# ------------------------------ JAX wrapper ---------------------------------


def _choose_tile_b(B: int) -> int:
    """Pick the batch (lane) tile.

    Multi-tile grids require lane-aligned tiles (multiples of 128), which both
    fills the MXU N-dimension and lets the "parallel" grid axis shard across
    v7x's two TensorCores; for small / odd batches a single snug 16-aligned
    tile avoids paying up to 127 columns of fully wasted forward compute.
    """
    if B > 1024:
        return 256
    if B > 128 and (-B) % 128 <= max(16, B // 8):
        return 128
    return max(16, -(-B // 16) * 16)


@functools.partial(jax.jit, static_argnames=("channels", "spatial", "num_classes"))
def gan_forward(x, labels, params, *, channels, spatial, num_classes):
    """GAN.forward(x, labels) = discriminator(generator(x), labels)."""
    del num_classes  # only present to mirror the torch module's config
    B, Z = x.shape
    F = channels * spatial * spatial
    H = params["g_w1"].shape[0]

    # --- wrapper-side constant folding & layout prep (discriminator frozen) ---
    # Embedding(labels) followed by the label half of the concat-Linear is a
    # constant (H, NC) table: fold it once, then gather one column per sample.
    emb_proj = jnp.dot(params["d_w_lab"].astype(jnp.float32),
                       params["d_emb"].T)                           # (H, NC)
    lab_t = jnp.take(emb_proj, labels, axis=1).astype(jnp.bfloat16)  # (H, B)

    # Latent transposed (batch on lanes) and cast to bf16 for streaming.
    z_t = x.astype(jnp.bfloat16).T                                   # (Z, B)

    # Pack the two (H,1) bias columns into a single resident block.
    b_cols = jnp.concatenate([params["g_b1"], params["d_b1"]], axis=1)  # (H, 2)

    tile_b = _choose_tile_b(B)
    Bp = -(-B // tile_b) * tile_b
    if Bp != B:
        z_t = jnp.pad(z_t, ((0, 0), (0, Bp - B)))
        lab_t = jnp.pad(lab_t, ((0, 0), (0, Bp - B)))
    grid = (Bp // tile_b,)

    col = lambda i: (0, i)   # batch-tiled operands (batch on the lane axis)
    rep = lambda i: (0, 0)   # resident operands (weights / biases)

    out = pl.pallas_call(
        _gan_fused_kernel,
        out_shape=jax.ShapeDtypeStruct((1, Bp), jnp.float32),
        grid=grid,
        in_specs=[
            pl.BlockSpec((Z, tile_b), col),                       # z^T (bf16)
            pl.BlockSpec((H, tile_b), col),                       # label proj (bf16)
            pl.BlockSpec((H, Z), rep),                            # g_w1 (bf16, (out,in))
            pl.BlockSpec((F, H), rep),                            # g_w2 (bf16)
            pl.BlockSpec((H, F), rep),                            # d_w_img (bf16)
            pl.BlockSpec((H, 2), rep),                            # [g_b1 | d_b1] (f32)
            pl.BlockSpec((F, 1), rep),                            # g_b2 (f32)
            pl.BlockSpec((1, H), rep),                            # d_w2 row (bf16)
            pl.BlockSpec(memory_space=pltpu.MemorySpace.SMEM),    # d_b2 scalar
        ],
        out_specs=pl.BlockSpec((1, tile_b), col),
        compiler_params=pltpu.CompilerParams(
            dimension_semantics=("parallel",)),
    )(z_t, lab_t,
      params["g_w1"], params["g_w2"], params["d_w_img"],
      b_cols, params["g_b2"], params["d_w2"], params["d_b2"])

    return out[0, :B].reshape(B, 1)


# ----------------------------- Parameter setup ------------------------------


def init_params(key, *, latent, hidden, channels, spatial, num_classes, emb_dim):
    """Weights stored in torch nn.Linear (out_features, in_features) layout."""
    F = channels * spatial * spatial
    ks = jax.random.split(key, 6)
    s = 0.05
    n = lambda k, shape: s * jax.random.normal(k, shape, jnp.float32)
    return {
        # Generator (bf16 matmul weights, f32 bias columns)
        "g_w1": n(ks[0], (hidden, latent)).astype(jnp.bfloat16),
        "g_b1": jnp.zeros((hidden, 1), jnp.float32),
        "g_w2": n(ks[1], (F, hidden)).astype(jnp.bfloat16),
        "g_b2": jnp.zeros((F, 1), jnp.float32),
        # Discriminator (frozen in torch; forward-only here)
        "d_emb": n(ks[2], (num_classes, emb_dim)),                 # folded in wrapper
        "d_w_img": n(ks[3], (hidden, F)).astype(jnp.bfloat16),
        "d_w_lab": n(ks[4], (hidden, emb_dim)).astype(jnp.bfloat16),
        "d_b1": jnp.zeros((hidden, 1), jnp.float32),
        "d_w2": n(ks[5], (1, hidden)).astype(jnp.bfloat16),
        "d_b2": jnp.zeros((1, 1), jnp.float32),                    # scalar -> SMEM
    }


def gan_reference(x, labels, p):
    """Pure-JAX reference of the same forward pass (f32 activations)."""
    f32 = lambda a: a.astype(jnp.float32)
    h = jnp.maximum(x @ f32(p["g_w1"]).T + p["g_b1"][:, 0], 0.0)
    img = jnp.tanh(h @ f32(p["g_w2"]).T + p["g_b2"][:, 0])
    lab = jnp.take(p["d_emb"], labels, axis=0)
    d_h = (img @ f32(p["d_w_img"]).T + lab @ f32(p["d_w_lab"]).T
           + p["d_b1"][:, 0])
    d_h = jnp.where(d_h > 0, d_h, 0.2 * d_h)
    logit = d_h @ f32(p["d_w2"]).T + p["d_b2"][0, 0]
    return jax.nn.sigmoid(logit)


# --------------------------------- Main --------------------------------------


if __name__ == "__main__":
    B, Z, H = 2, 32, 128      # H = one full lane width
    C, S = 4, 8               # generated image (B, 4, 8, 8) -> F = 256 (128-aligned)
    NC, E = 10, 16

    key = jax.random.PRNGKey(0)
    k_x, k_lab, k_p = jax.random.split(key, 3)

    x = jax.random.normal(k_x, (B, Z), jnp.float32)                # latent input
    labels = jax.random.randint(k_lab, (B,), 0, NC, jnp.int32)
    params = init_params(k_p, latent=Z, hidden=H, channels=C, spatial=S,
                         num_classes=NC, emb_dim=E)

    out = gan_forward(x, labels, params, channels=C, spatial=S, num_classes=NC)
    out = jax.block_until_ready(out)
    ref = gan_reference(x, labels, params)

    assert out.shape == (B, 1)
    assert out.dtype == jnp.float32
    assert bool(jnp.all(jnp.isfinite(out)))
    assert bool(jnp.all((out >= 0.0) & (out <= 1.0)))
    # bf16 matmul inputs vs f32 reference: generous but meaningful tolerance.
    assert float(jnp.max(jnp.abs(out - ref))) < 2e-2

    print("KERNEL_OK")
</pallas_src>

<mosaic_0001>
module attributes {stable_mosaic.version = 11 : i64} {
  func.func @_gan_fused_kernel(%arg0: i32, %arg1: memref<32x16xbf16, #tpu.memory_space<vmem>>, %arg2: memref<128x16xbf16, #tpu.memory_space<vmem>>, %arg3: memref<128x32xbf16, #tpu.memory_space<vmem>>, %arg4: memref<256x128xbf16, #tpu.memory_space<vmem>>, %arg5: memref<128x256xbf16, #tpu.memory_space<vmem>>, %arg6: memref<128x2xf32, #tpu.memory_space<vmem>>, %arg7: memref<256x1xf32, #tpu.memory_space<vmem>>, %arg8: memref<1x128xbf16, #tpu.memory_space<vmem>>, %arg9: memref<1x1xf32, #tpu.memory_space<smem>>, %arg10: memref<1x16xf32, #tpu.memory_space<vmem>>) attributes {dimension_semantics = [#tpu.dimension_semantics<parallel>], iteration_bounds = array<i64: 1>, scalar_prefetch = 0 : i64, scratch_operands = 0 : i64, tpu.core_type = #tpu.core_type<tc>, window_params = [{transform_indices = @transform_0, window_bounds = array<i64: 32, 16>}, {transform_indices = @transform_1, window_bounds = array<i64: 128, 16>}, {pipeline_mode = #tpu.pipeline_mode<synchronous>, transform_indices = @transform_2, window_bounds = array<i64: 128, 32>}, {pipeline_mode = #tpu.pipeline_mode<synchronous>, transform_indices = @transform_3, window_bounds = array<i64: 256, 128>}, {pipeline_mode = #tpu.pipeline_mode<synchronous>, transform_indices = @transform_4, window_bounds = array<i64: 128, 256>}, {pipeline_mode = #tpu.pipeline_mode<synchronous>, transform_indices = @transform_5, window_bounds = array<i64: 128, 2>}, {pipeline_mode = #tpu.pipeline_mode<synchronous>, transform_indices = @transform_6, window_bounds = array<i64: 256, 1>}, {pipeline_mode = #tpu.pipeline_mode<synchronous>, transform_indices = @transform_7, window_bounds = array<i64: 1, 128>}, {transform_indices = @transform_8, window_bounds = array<i64: 1, 1>}, {transform_indices = @transform_9, window_bounds = array<i64: 1, 16>}]} {
    %c0 = arith.constant 0 : index
    %c0_0 = arith.constant 0 : index
    %0 = vector.load %arg6[%c0, %c0_0] : memref<128x2xf32, #tpu.memory_space<vmem>>, vector<128x1xf32>
    %c0_1 = arith.constant 0 : index
    %c1 = arith.constant 1 : index
    %1 = vector.load %arg6[%c0_1, %c1] : memref<128x2xf32, #tpu.memory_space<vmem>>, vector<128x1xf32>
    %c0_2 = arith.constant 0 : index
    %c0_3 = arith.constant 0 : index
    %2 = vector.load %arg3[%c0_2, %c0_3] : memref<128x32xbf16, #tpu.memory_space<vmem>>, vector<128x32xbf16>
    %c0_4 = arith.constant 0 : index
    %c0_5 = arith.constant 0 : index
    %3 = vector.load %arg1[%c0_4, %c0_5] : memref<32x16xbf16, #tpu.memory_space<vmem>>, vector<32x16xbf16>
    %cst = arith.constant dense<0.000000e+00> : vector<128x16xf32>
    %4 = tpu.matmul %2, %3, %cst {dimension_numbers = #tpu.dot_dimension_numbers<[1], [0], [0], [1], [0, 0, 1, 1], [], []>} : vector<128x32xbf16>, vector<32x16xbf16>, vector<128x16xf32> -> vector<128x16xf32>
    %5 = vector.broadcast %0 : vector<128x1xf32> to vector<128x16xf32>
    %6 = arith.addf %4, %5 : vector<128x16xf32>
    %cst_6 = arith.constant 0.000000e+00 : f32
    %7 = vector.broadcast %cst_6 : f32 to vector<128x16xf32>
    %8 = arith.maximumf %6, %7 : vector<128x16xf32>
    %c0_7 = arith.constant 0 : index
    %c0_8 = arith.constant 0 : index
    %9 = vector.load %arg4[%c0_7, %c0_8] : memref<256x128xbf16, #tpu.memory_space<vmem>>, vector<256x128xbf16>
    %10 = arith.truncf %8 : vector<128x16xf32> to vector<128x16xbf16>
    %cst_9 = arith.constant dense<0.000000e+00> : vector<256x16xf32>
    %11 = tpu.matmul %9, %10, %cst_9 {dimension_numbers = #tpu.dot_dimension_numbers<[1], [0], [0], [1], [0, 0, 1, 1], [], []>} : vector<256x128xbf16>, vector<128x16xbf16>, vector<256x16xf32> -> vector<256x16xf32>
    %c0_10 = arith.constant 0 : index
    %c0_11 = arith.constant 0 : index
    %12 = vector.load %arg7[%c0_10, %c0_11] : memref<256x1xf32, #tpu.memory_space<vmem>>, vector<256x1xf32>
    %13 = vector.broadcast %12 : vector<256x1xf32> to vector<256x16xf32>
    %14 = arith.addf %11, %13 : vector<256x16xf32>
    %15 = math.tanh %14 : vector<256x16xf32>
    %c0_12 = arith.constant 0 : index
    %c0_13 = arith.constant 0 : index
    %16 = vector.load %arg5[%c0_12, %c0_13] : memref<128x256xbf16, #tpu.memory_space<vmem>>, vector<128x256xbf16>
    %17 = arith.truncf %15 : vector<256x16xf32> to vector<256x16xbf16>
    %cst_14 = arith.constant dense<0.000000e+00> : vector<128x16xf32>
    %18 = tpu.matmul %16, %17, %cst_14 {dimension_numbers = #tpu.dot_dimension_numbers<[1], [0], [0], [1], [0, 0, 1, 1], [], []>} : vector<128x256xbf16>, vector<256x16xbf16>, vector<128x16xf32> -> vector<128x16xf32>
    %c0_15 = arith.constant 0 : index
    %c0_16 = arith.constant 0 : index
    %19 = vector.load %arg2[%c0_15, %c0_16] : memref<128x16xbf16, #tpu.memory_space<vmem>>, vector<128x16xbf16>
    %20 = arith.extf %19 : vector<128x16xbf16> to vector<128x16xf32>
    %21 = arith.addf %18, %20 : vector<128x16xf32>
    %22 = vector.broadcast %1 : vector<128x1xf32> to vector<128x16xf32>
    %23 = arith.addf %21, %22 : vector<128x16xf32>
    %cst_17 = arith.constant 2.000000e-01 : f32
    %24 = vector.broadcast %cst_17 : f32 to vector<128x16xf32>
    %25 = arith.mulf %24, %23 : vector<128x16xf32>
    %26 = arith.maximumf %23, %25 : vector<128x16xf32>
    %c0_18 = arith.constant 0 : index
    %c0_19 = arith.constant 0 : index
    %27 = vector.load %arg8[%c0_18, %c0_19] : memref<1x128xbf16, #tpu.memory_space<vmem>>, vector<1x128xbf16>
    %28 = arith.truncf %26 : vector<128x16xf32> to vector<128x16xbf16>
    %cst_20 = arith.constant dense<0.000000e+00> : vector<1x16xf32>
    %29 = tpu.matmul %27, %28, %cst_20 {dimension_numbers = #tpu.dot_dimension_numbers<[1], [0], [0], [1], [0, 0, 1, 1], [], []>} : vector<1x128xbf16>, vector<128x16xbf16>, vector<1x16xf32> -> vector<1x16xf32>
    %c0_21 = arith.constant 0 : index
    %c0_22 = arith.constant 0 : index
    %30 = memref.load %arg9[%c0_21, %c0_22] : memref<1x1xf32, #tpu.memory_space<smem>>
    %31 = vector.broadcast %30 : f32 to vector<1x16xf32>
    %32 = arith.addf %29, %31 : vector<1x16xf32>
    %33 = math.absf %32 : vector<1x16xf32>
    %cst_23 = arith.constant 0.000000e+00 : f32
    %34 = vector.broadcast %cst_23 : f32 to vector<1x16xf32>
    %35 = arith.subf %34, %33 : vector<1x16xf32>
    %36 = math.exp %35 : vector<1x16xf32>
    %cst_24 = arith.constant 0.000000e+00 : f32
    %37 = vector.broadcast %cst_24 : f32 to vector<1x16xf32>
    %38 = arith.cmpf oge, %32, %37 : vector<1x16xf32>
    %cst_25 = arith.constant 1.000000e+00 : f32
    %39 = vector.broadcast %cst_25 : f32 to vector<1x16xf32>
    %40 = arith.addf %39, %36 : vector<1x16xf32>
    %cst_26 = arith.constant 1.000000e+00 : f32
    %41 = vector.broadcast %cst_26 : f32 to vector<1x16xf32>
    %42 = arith.divf %41, %40 : vector<1x16xf32>
    %cst_27 = arith.constant 1.000000e+00 : f32
    %43 = vector.broadcast %cst_27 : f32 to vector<1x16xf32>
    %44 = arith.addf %43, %36 : vector<1x16xf32>
    %45 = arith.divf %36, %44 : vector<1x16xf32>
    %46 = arith.select %38, %42, %45 : vector<1x16xi1>, vector<1x16xf32>
    %c0_28 = arith.constant 0 : index
    %c0_29 = arith.constant 0 : index
    %47 = vector.load %arg10[%c0_28, %c0_29] : memref<1x16xf32, #tpu.memory_space<vmem>>, vector<1x16xf32>
    tpu.vector_store %arg10[%c0_28, %c0_29], %46 {strides = array<i32>} : memref<1x16xf32, #tpu.memory_space<vmem>>, vector<1x16xf32>,
    return
  }
  func.func @transform_0(%arg0: i32) -> (i32, i32) {
    %c0_i32 = arith.constant 0 : i32
    %c0_i32_0 = arith.constant 0 : i32
    return %c0_i32, %arg0 : i32, i32
  }
  func.func @transform_1(%arg0: i32) -> (i32, i32) {
    %c0_i32 = arith.constant 0 : i32
    %c0_i32_0 = arith.constant 0 : i32
    return %c0_i32, %arg0 : i32, i32
  }
  func.func @transform_2(%arg0: i32) -> (i32, i32) {
    %c0_i32 = arith.constant 0 : i32
    %c0_i32_0 = arith.constant 0 : i32
    %c0_i32_1 = arith.constant 0 : i32
    return %c0_i32, %c0_i32_0 : i32, i32
  }
  func.func @transform_3(%arg0: i32) -> (i32, i32) {
    %c0_i32 = arith.constant 0 : i32
    %c0_i32_0 = arith.constant 0 : i32
    %c0_i32_1 = arith.constant 0 : i32
    return %c0_i32, %c0_i32_0 : i32, i32
  }
  func.func @transform_4(%arg0: i32) -> (i32, i32) {
    %c0_i32 = arith.constant 0 : i32
    %c0_i32_0 = arith.constant 0 : i32
    %c0_i32_1 = arith.constant 0 : i32
    return %c0_i32, %c0_i32_0 : i32, i32
  }
  func.func @transform_5(%arg0: i32) -> (i32, i32) {
    %c0_i32 = arith.constant 0 : i32
    %c0_i32_0 = arith.constant 0 : i32
    %c0_i32_1 = arith.constant 0 : i32
    return %c0_i32, %c0_i32_0 : i32, i32
  }
  func.func @transform_6(%arg0: i32) -> (i32, i32) {
    %c0_i32 = arith.constant 0 : i32
    %c0_i32_0 = arith.constant 0 : i32
    %c0_i32_1 = arith.constant 0 : i32
    return %c0_i32, %c0_i32_0 : i32, i32
  }
  func.func @transform_7(%arg0: i32) -> (i32, i32) {
    %c0_i32 = arith.constant 0 : i32
    %c0_i32_0 = arith.constant 0 : i32
    %c0_i32_1 = arith.constant 0 : i32
    return %c0_i32, %c0_i32_0 : i32, i32
  }
  func.func @transform_8(%arg0: i32) -> (i32, i32) {
    %c0_i32 = arith.constant 0 : i32
    %c0_i32_0 = arith.constant 0 : i32
    %c0_i32_1 = arith.constant 0 : i32
    return %c0_i32, %c0_i32_0 : i32, i32
  }
  func.func @transform_9(%arg0: i32) -> (i32, i32) {
    %c0_i32 = arith.constant 0 : i32
    %c0_i32_0 = arith.constant 0 : i32
    return %c0_i32, %arg0 : i32, i32
  }
}

</mosaic_0001>

<bundles_post_ra>
// kernel: gan_forward.1
= control target key start
LH: loop header
LB: loop body
LE: loop exit
PB: predicated region body
PF: predicated region fallthrough
CT: control target
= control target key end

     0   :  { %v1691_v0 = vmov 0   ;;  %vm202_vm0 = vcmask 261120   ;;  %vm1694_vm1 = vmmov 0   ;;  %vm1275_vm2 = vcmask 122880   ;;  %s2249_s5 = inlined_call_operand.vmem [shape: f32[128,2], index: 5, kind: input, shape index: {}]   ;;  %s2250_s0 = inlined_call_operand.vmem [shape: bf16[32,16], index: 0, kind: input, shape index: {}]   ;;  %s2251_s2 = inlined_call_operand.vmem [shape: bf16[128,32], index: 2, kind: input, shape index: {}]   ;;  %s2252_s6 = inlined_call_operand.vmem [shape: f32[256,1], index: 6, kind: input, shape index: {}]   ;;  %s2253_s3 = inlined_call_operand.vmem [shape: bf16[256,128], index: 3, kind: input, shape index: {}]   ;;  %s2254_s4 = inlined_call_operand.vmem [shape: bf16[128,256], index: 4, kind: input, shape index: {}]   ;;  %s2255_s1 = inlined_call_operand.vmem [shape: bf16[128,16], index: 1, kind: input, shape index: {}]   ;;  %s2256_s7 = inlined_call_operand.vmem [shape: bf16[1,128], index: 7, kind: input, shape index: {}]   ;;  %s2257_s8 = inlined_call_operand.<no memory space> [shape: f32[1,1], index: 8, kind: input, shape index: {}]   ;;  %s2258_s9 = inlined_call_operand.vmem [shape: f32[1,16], index: 9, kind: output, shape index: {}]  }
   0x1   :  { %1569 = vset.pattern.permute.xlu0 %v1691_v0  ;;  %v1748_v1 = vld [vmem:[%s2249_s5] sm:$0xff]  ;;  %1570 = vset.pattern.permute.xlu1 %v1691_v0  ;;  %v1757_v3 = vld [vmem:[%s2249_s5 + $0x10] sm:$0xff]  ;;  %v1762_v4 = vld [vmem:[%s2249_s5 + $0x8] sm:$0xff] }
   0x2   :  { %72 = vperm.xlu0 %1569, %v1748_v1   ;;  %v1573_v2 = vld [vmem:[%s2250_s0] sm:$0xff]   ;;  %82 = vperm.xlu1 %1570, %v1757_v3   ;;  %v1574_v5 = vld [vmem:[%s2250_s0 + $0x8] sm:$0xff]   ;;  %v1771_v6 = vld [vmem:[%s2249_s5 + $0x18] sm:$0xff] }
   0x3   :  { %1477 = vmatprep.subr.bf16.mxu0 %v1573_v2  ;;  %v1575_v7 = vld [vmem:[%s2251_s2] sm:$0xff]   ;;  %v1576_v9 = vld [vmem:[%s2251_s2 + $0x8] sm:$0xff]   ;;  %v1577_v11 = vld [vmem:[%s2251_s2 + $0x10] sm:$0xff]  }
   0x4   :  { %1478 = vmatpush3.bf16.msra.mxu0 %v1573_v2  ;;  %v1781_v8 = vld [vmem:[%s2249_s5 + $0x20] sm:$0xff]  ;;  %1481 = vmatprep.mubr.msk.bf16.mxu0 %vm202_vm0, %v1575_v7  ;;  %v1790_v10 = vld [vmem:[%s2249_s5 + $0x28] sm:$0xff]  ;;  %v1800_v12 = vld [vmem:[%s2249_s5 + $0x30] sm:$0xff] }
   0x5   :  { %1479 = vmatprep.subr.bf16.mxu0 %v1574_v5  ;;  %v1806_v13 = vld [vmem:[%s2249_s5 + $0x38] sm:$0xff]  ;;  %v1814_v14 = vld [vmem:[%s2249_s5 + $0x40] sm:$0xff]  ;;  %v1822_v16 = vld [vmem:[%s2249_s5 + $0x48] sm:$0xff] }
   0x6   :  { %77 = vperm.xlu0 %1569, %v1762_v4   ;;  %87 = vperm.xlu1 %1570, %v1771_v6   ;;  %v1578_v15 = vld [vmem:[%s2251_s2 + $0x18] sm:$0xff]   ;;  %v1579_v17 = vld [vmem:[%s2251_s2 + $0x20] sm:$0xff]   ;;  %v1832_v18 = vld [vmem:[%s2249_s5 + $0x50] sm:$0xff] }
   0x7   :  { %v1838_v19 = vld [vmem:[%s2249_s5 + $0x58] sm:$0xff]  ;;  %v1846_v20 = vld [vmem:[%s2249_s5 + $0x60] sm:$0xff]  ;;  %v1580_v21 = vld [vmem:[%s2251_s2 + $0x28] sm:$0xff]  }
   0x8   :  { %1480 = vmatpush3.bf16.msra.mxu0 %v1574_v5  ;;  %v1854_v22 = vld [vmem:[%s2249_s5 + $0x68] sm:$0xff]  ;;  %v1581_v23 = vld [vmem:[%s2251_s2 + $0x30] sm:$0xff]   ;;  %v1870_v25 = vld [vmem:[%s2249_s5 + $0x78] sm:$0xff] }
   0x9   :  { %v1864_v24 = vld [vmem:[%s2249_s5 + $0x70] sm:$0xff]  ;;  %v396_v26 = vld [vmem:[%s2252_s6 + $0x80] sm:$0xff]  ;;  %v1582_v27 = vld [vmem:[%s2251_s2 + $0x38] sm:$0xff]  }
   0xa   :  { %92 = vperm.xlu0 %1569, %v1781_v8   ;;  %97 = vperm.xlu1 %1570, %v1790_v10   ;;  %v397_v28 = vld [vmem:[%s2252_s6 + $0x88] sm:$0xff]  ;;  %v380_v29 = vld [vmem:[%s2252_s6] sm:$0xff]  ;;  %v398_v31 = vld [vmem:[%s2252_s6 + $0x90] sm:$0xff] }
   0xb   :  { %1482 = vmatmul.mubr.msk.bf16.vlgmr.msra.gmra.mrb[0].mxu0 %vm202_vm0, %v1576_v9  ;;  %v381_v30 = vld [vmem:[%s2252_s6 + $0x8] sm:$0xff]  ;;  %v399_v32 = vld [vmem:[%s2252_s6 + $0x98] sm:$0xff]  ;;  %v382_v33 = vld [vmem:[%s2252_s6 + $0x10] sm:$0xff] }
   0xc   :  { %1485 = vmatprep.mubr.msk.bf16.mxu0 %vm202_vm0, %v1577_v11  ;;  %v383_v34 = vld [vmem:[%s2252_s6 + $0x18] sm:$0xff]  ;;  %v400_v35 = vld [vmem:[%s2252_s6 + $0xa0] sm:$0xff]  ;;  %v401_v36 = vld [vmem:[%s2252_s6 + $0xa8] sm:$0xff] }
   0xd   :  { %v384_v37 = vld [vmem:[%s2252_s6 + $0x20] sm:$0xff]  ;;  %v385_v38 = vld [vmem:[%s2252_s6 + $0x28] sm:$0xff]  ;;  %v402_v39 = vld [vmem:[%s2252_s6 + $0xb0] sm:$0xff] }
   0xe   :  { %102 = vperm.xlu0 %1569, %v1800_v12   ;;  %107 = vperm.xlu1 %1570, %v1806_v13   ;;  %v403_v40 = vld [vmem:[%s2252_s6 + $0xb8] sm:$0xff]  ;;  %v386_v41 = vld [vmem:[%s2252_s6 + $0x30] sm:$0xff]  ;;  %v404_v43 = vld [vmem:[%s2252_s6 + $0xc0] sm:$0xff] }
   0xf   :  { %v387_v42 = vld [vmem:[%s2252_s6 + $0x38] sm:$0xff]  ;;  %v405_v44 = vld [vmem:[%s2252_s6 + $0xc8] sm:$0xff]  ;;  %v388_v45 = vld [vmem:[%s2252_s6 + $0x40] sm:$0xff] }
  0x10   :  { %v389_v46 = vld [vmem:[%s2252_s6 + $0x48] sm:$0xff]  ;;  %v406_v47 = vld [vmem:[%s2252_s6 + $0xd0] sm:$0xff]  ;;  %v407_v48 = vld [vmem:[%s2252_s6 + $0xd8] sm:$0xff] }
  0x11   :  { %v390_v49 = vld [vmem:[%s2252_s6 + $0x50] sm:$0xff]  ;;  %v391_v50 = vld [vmem:[%s2252_s6 + $0x58] sm:$0xff]  ;;  %v408_v51 = vld [vmem:[%s2252_s6 + $0xe0] sm:$0xff] }
  0x12   :  { %112 = vperm.xlu0 %1569, %v1814_v14   ;;  %117 = vperm.xlu1 %1570, %v1822_v16   ;;  %v409_v52 = vld [vmem:[%s2252_s6 + $0xe8] sm:$0xff]  ;;  %v392_v53 = vld [vmem:[%s2252_s6 + $0x60] sm:$0xff]  ;;  %v410_v55 = vld [vmem:[%s2252_s6 + $0xf0] sm:$0xff] }
  0x13   :  { %1486 = vmatmul.mubr.msk.bf16.gmra.mrb[4].mxu0 %vm202_vm0, %v1578_v15  ;;  %v393_v54 = vld [vmem:[%s2252_s6 + $0x68] sm:$0xff]  ;;  %v411_v56 = vld [vmem:[%s2252_s6 + $0xf8] sm:$0xff]  ;;  %v394_v57 = vld [vmem:[%s2252_s6 + $0x70] sm:$0xff] }
  0x14   :  { %1489 = vmatprep.mubr.msk.bf16.mxu0 %vm202_vm0, %v1579_v17  ;;  %v395_v58 = vld [vmem:[%s2252_s6 + $0x78] sm:$0xff]  ;;  %v1583_v59 = vld [vmem:[%s2253_s3] sm:$0xff]  }
  0x15   :  { %1513 = vmatprep.mubr.bf16.mxu1 %v1583_v59 }
  0x16   :  { %122 = vperm.xlu0 %1569, %v1832_v18   ;;  %127 = vperm.xlu1 %1570, %v1838_v19  }
  0x1a   :  { %132 = vperm.xlu0 %1569, %v1846_v20   ;;  %137 = vperm.xlu1 %1570, %v1854_v22  }
  0x1b   :  { %1490 = vmatmul.mubr.msk.bf16.gmra.mrb[8].mxu0 %vm202_vm0, %v1580_v21 }
  0x1c   :  { %1493 = vmatprep.mubr.msk.bf16.mxu0 %vm202_vm0, %v1581_v23 }
  0x1e   :  { %142 = vperm.xlu0 %1569, %v1864_v24   ;;  %147 = vperm.xlu1 %1570, %v1870_v25  }
  0x22   :  { %494 = vperm.xlu0 %1569, %v396_v26   ;;  %499 = vperm.xlu1 %1570, %v397_v28  }
  0x23   :  { %1494 = vmatmul.mubr.msk.bf16.gmra.mrb[12].mxu0 %vm202_vm0, %v1582_v27 }
  0x26   :  { %414 = vperm.xlu0 %1569, %v380_v29   ;;  %419 = vperm.xlu1 %1570, %v381_v30  }
  0x2a   :  { %504 = vperm.xlu0 %1569, %v398_v31   ;;  %509 = vperm.xlu1 %1570, %v399_v32  }
  0x2e   :  { %424 = vperm.xlu0 %1569, %v382_v33   ;;  %429 = vperm.xlu1 %1570, %v383_v34  }
  0x32   :  { %514 = vperm.xlu0 %1569, %v400_v35   ;;  %519 = vperm.xlu1 %1570, %v401_v36  }
  0x36   :  { %434 = vperm.xlu0 %1569, %v384_v37   ;;  %439 = vperm.xlu1 %1570, %v385_v38  }
  0x3a   :  { %524 = vperm.xlu0 %1569, %v402_v39   ;;  %529 = vperm.xlu1 %1570, %v403_v40  }
  0x3e   :  { %444 = vperm.xlu0 %1569, %v386_v41   ;;  %449 = vperm.xlu1 %1570, %v387_v42  }
  0x42   :  { %534 = vperm.xlu0 %1569, %v404_v43   ;;  %539 = vperm.xlu1 %1570, %v405_v44  }
  0x46   :  { %454 = vperm.xlu0 %1569, %v388_v45   ;;  %459 = vperm.xlu1 %1570, %v389_v46  }
  0x4a   :  { %544 = vperm.xlu0 %1569, %v406_v47   ;;  %549 = vperm.xlu1 %1570, %v407_v48  }
  0x4e   :  { %464 = vperm.xlu0 %1569, %v390_v49   ;;  %469 = vperm.xlu1 %1570, %v391_v50  }
  0x52   :  { %554 = vperm.xlu0 %1569, %v408_v51   ;;  %559 = vperm.xlu1 %1570, %v409_v52  }
  0x56   :  { %474 = vperm.xlu0 %1569, %v392_v53   ;;  %479 = vperm.xlu1 %1570, %v393_v54  }
  0x5a   :  { %564 = vperm.xlu0 %1569, %v410_v55   ;;  %569 = vperm.xlu1 %1570, %v411_v56  }
  0x5e   :  { %484 = vperm.xlu0 %1569, %v394_v57   ;;  %489 = vperm.xlu1 %1570, %v395_v58  }
  0x81   :  { %v73_v60 = vpop.permute.xlu0 %72  ;;  %v83_v61 = vpop.permute.xlu1 %82 }
  0x85   :  { %v78_v62 = vpop.permute.xlu0 %77  ;;  %v88_v63 = vpop.permute.xlu1 %87 }
  0x89   :  { %v93_v0 = vpop.permute.xlu0 %92  ;;  %v98_v2 = vpop.permute.xlu1 %97 }
  0x8d   :  { %v103_v5 = vpop.permute.xlu0 %102  ;;  %v108_v15 = vpop.permute.xlu1 %107 }
  0x91   :  { %v113_v30 = vpop.permute.xlu0 %112  ;;  %v118_v34 = vpop.permute.xlu1 %117 }
  0x95   :  { %v123_v43 = vpop.permute.xlu0 %122  ;;  %v128_v47 = vpop.permute.xlu1 %127 }
  0x99   :  { %v133_v55 = vpop.permute.xlu0 %132 }
  0xde   :  { %v1483_v7 = vpop.f32.mrb[0].mxu0 }
  0xdf   :  { %v270_v9 = vadd.f32 %v1483_v7, %v83_v61  ;;  %v261_v11 = vpop.f32.mrb[1].mxu0  ;;  %v143_v7 = vpop.permute.xlu0 %142 }
  0xe0   :  { %v262_v17 = vadd.f32 %v261_v11, %v73_v60  ;;  %v1484_v21 = vpop.f32.mrb[2].mxu0  ;;  %v138_v60 = vpop.permute.xlu1 %137 }
  0xe1   :  { %v273_v23 = vadd.f32 %v1484_v21, %v88_v63  ;;  %v264_v26 = vpop.f32.mrb[3].mxu0  ;;  %v326_v28 = vmax.f32 %v270_v9, 0.0 }
  0xe2   :  { %v265_v27 = vadd.f32 %v264_v26, %v78_v62  ;;  %v324_v31 = vmax.f32 %v262_v17, 0.0 }
  0xe3   :  { %v327_v29 = vmax.f32 %v273_v23, 0.0 }
  0xe4   :  { %v325_v32 = vmax.f32 %v265_v27, 0.0  ;;  %v148_v21 = vpop.permute.xlu1 %147 }
  0xe5   :  { %v373_v33 = vpack.c.bf16 %v327_v29, %v326_v28 }
  0xe6   :  { %v1487_v35 = vpop.f32.mrb[4].mxu0  ;;  %v372_v36 = vpack.c.bf16 %v325_v32, %v324_v31 }
  0xe7   :  { %v286_v37 = vadd.f32 %v1487_v35, %v103_v5  ;;  %v277_v38 = vpop.f32.mrb[5].mxu0 }
  0xe8   :  { %v278_v39 = vadd.f32 %v277_v38, %v93_v0  ;;  %v1488_v40 = vpop.f32.mrb[6].mxu0  ;;  %1497 = vmatprep.subr.bf16.mxu1 %v372_v36  ;;  %v1586_v38 = vld [vmem:[%s2253_s3 + $0x18] sm:$0xff]  }
  0xe9   :  { %v289_v41 = vadd.f32 %v1488_v40, %v108_v15  ;;  %v280_v42 = vpop.f32.mrb[7].mxu0  ;;  %1498 = vmatpush3.bf16.msra.mxu1 %v372_v36  ;;  %v330_v45 = vmax.f32 %v286_v37, 0.0  ;;  %v1584_v36 = vld [vmem:[%s2253_s3 + $0x8] sm:$0xff]   ;;  %v1585_v37 = vld [vmem:[%s2253_s3 + $0x10] sm:$0xff]  }
  0xea   :  { %v281_v44 = vadd.f32 %v280_v42, %v98_v2  ;;  %1499 = vmatprep.subr.bf16.mxu1 %v373_v33  ;;  %v328_v48 = vmax.f32 %v278_v39, 0.0  ;;  %v1587_v39 = vld [vmem:[%s2253_s3 + $0x20] sm:$0xff]   ;;  %v1588_v40 = vld [vmem:[%s2253_s3 + $0x28] sm:$0xff]   ;;  %v1590_v42 = vld [vmem:[%s2253_s3 + $0x38] sm:$0xff]  }
  0xeb   :  { %v331_v46 = vmax.f32 %v289_v41, 0.0  ;;  %v1589_v41 = vld [vmem:[%s2253_s3 + $0x30] sm:$0xff]  }
  0xec   :  { %v329_v49 = vmax.f32 %v281_v44, 0.0  ;;  %v1592_v44 = vld [vmem:[%s2253_s3 + $0x48] sm:$0xff]  }
  0xed   :  { %v375_v50 = vpack.c.bf16 %v331_v46, %v330_v45  ;;  %1500 = vmatpush3.bf16.msra.mxu1 %v373_v33  ;;  %v1593_v45 = vld [vmem:[%s2253_s3 + $0x50] sm:$0xff]   ;;  %v1594_v46 = vld [vmem:[%s2253_s3 + $0x58] sm:$0xff]  }
  0xee   :  { %v374_v51 = vpack.c.bf16 %v329_v49, %v328_v48  ;;  %v1491_v52 = vpop.f32.mrb[8].mxu0  ;;  %v1596_v48 = vld [vmem:[%s2253_s3 + $0x68] sm:$0xff]   ;;  %v1597_v49 = vld [vmem:[%s2253_s3 + $0x70] sm:$0xff]  }
  0xef   :  { %v302_v53 = vadd.f32 %v1491_v52, %v123_v43  ;;  %v293_v54 = vpop.f32.mrb[9].mxu0  ;;  %v1591_v43 = vld [vmem:[%s2253_s3 + $0x40] sm:$0xff]   ;;  %v2025_v52 = vpop.permute.xlu1 %499 }
  0xf0   :  { %v294_v56 = vadd.f32 %v293_v54, %v113_v30  ;;  %v1492_v57 = vpop.f32.mrb[10].mxu0  ;;  %1501 = vmatprep.subr.bf16.mxu1 %v374_v51 }
  0xf1   :  { %v305_v58 = vadd.f32 %v1492_v57, %v128_v47  ;;  %v296_v59 = vpop.f32.mrb[11].mxu0  ;;  %1502 = vmatpush3.bf16.msra.mxu1 %v374_v51  ;;  %v334_v62 = vmax.f32 %v302_v53, 0.0  ;;  %v1595_v47 = vld [vmem:[%s2253_s3 + $0x60] sm:$0xff]   ;;  %v2023_v51 = vpop.permute.xlu0 %494 }
  0xf2   :  { %v297_v61 = vadd.f32 %v296_v59, %v118_v34  ;;  %1503 = vmatprep.subr.bf16.mxu1 %v375_v50  ;;  %v332_v0 = vmax.f32 %v294_v56, 0.0 }
  0xf3   :  { %v335_v63 = vmax.f32 %v305_v58, 0.0  ;;  %v420_v54 = vpop.permute.xlu1 %419  ;;  %v1601_v58 = vld [vmem:[%s2254_s4 + $0x4] ss:$8 sps:$4 sm:$0xff]  }
  0xf4   :  { %v333_v2 = vmax.f32 %v297_v61, 0.0  ;;  %1037 = vmatprep.mubr.bf16.mxu0 %v1601_v58 }
  0xf5   :  { %v377_v5 = vpack.c.bf16 %v335_v63, %v334_v62  ;;  %1504 = vmatpush3.bf16.msra.mxu1 %v375_v50  ;;  %v1598_v50 = vld [vmem:[%s2253_s3 + $0x78] sm:$0xff]   ;;  %v415_v53 = vpop.permute.xlu0 %414 }
  0xf6   :  { %v376_v9 = vpack.c.bf16 %v333_v2, %v332_v0  ;;  %v1495_v11 = vpop.f32.mrb[12].mxu0 }
  0xf7   :  { %v318_v15 = vadd.f32 %v1495_v11, %v143_v7  ;;  %v309_v17 = vpop.f32.mrb[13].mxu0  ;;  %v2029_v56 = vpop.permute.xlu1 %509 }
  0xf8   :  { %v310_v23 = vadd.f32 %v309_v17, %v133_v55  ;;  %v1496_v26 = vpop.f32.mrb[14].mxu0  ;;  %1505 = vmatprep.subr.bf16.mxu1 %v376_v9 }
  0xf9   :  { %v321_v27 = vadd.f32 %v1496_v26, %v148_v21  ;;  %v312_v28 = vpop.f32.mrb[15].mxu0  ;;  %1506 = vmatpush3.bf16.msra.mxu1 %v376_v9  ;;  %v338_v30 = vmax.f32 %v318_v15, 0.0  ;;  %v2027_v55 = vpop.permute.xlu0 %504 }
  0xfa   :  { %v313_v29 = vadd.f32 %v312_v28, %v138_v60  ;;  %1507 = vmatprep.subr.bf16.mxu1 %v377_v5  ;;  %v336_v32 = vmax.f32 %v310_v23, 0.0 }
  0xfb   :  { %v339_v31 = vmax.f32 %v321_v27, 0.0  ;;  %v430_v59 = vpop.permute.xlu1 %429 }
  0xfc   :  { %v337_v33 = vmax.f32 %v313_v29, 0.0 }
  0xfd   :  { %v379_v34 = vpack.c.bf16 %v339_v31, %v338_v30  ;;  %1508 = vmatpush3.bf16.msra.mxu1 %v377_v5  ;;  %v425_v57 = vpop.permute.xlu0 %424 }
  0xfe   :  { %v378_v35 = vpack.c.bf16 %v337_v33, %v336_v32 }
  0xff   :  { %v2036_v61 = vpop.permute.xlu1 %519 }
 0x100   :  { %1509 = vmatprep.subr.bf16.mxu1 %v378_v35 }
 0x101   :  { %1510 = vmatpush3.bf16.msra.mxu1 %v378_v35  ;;  %v2034_v60 = vpop.permute.xlu0 %514 }
 0x102   :  { %1511 = vmatprep.subr.bf16.mxu1 %v379_v34 }
 0x103   :  { %v440_v63 = vpop.permute.xlu1 %439 }
 0x105   :  { %1512 = vmatpush3.bf16.msra.mxu1 %v379_v34  ;;  %v435_v62 = vpop.permute.xlu0 %434 }
 0x107   :  { %v2040_v2 = vpop.permute.xlu1 %529 }
 0x108   :  { %1514 = vmatmul.mubr.bf16.vlgmr.msra.gmra.mrb[0].mxu1 %v1584_v36 }
 0x109   :  { %1517 = vmatprep.mubr.bf16.mxu1 %v1585_v37  ;;  %v2038_v0 = vpop.permute.xlu0 %524 }
 0x10b   :  { %v450_v7 = vpop.permute.xlu1 %449 }
 0x10d   :  { %v445_v5 = vpop.permute.xlu0 %444 }
 0x10f   :  { %v2044_v11 = vpop.permute.xlu1 %539 }
 0x110   :  { %1518 = vmatmul.mubr.bf16.gmra.mrb[4].mxu1 %v1586_v38 }
 0x111   :  { %1521 = vmatprep.mubr.bf16.mxu1 %v1587_v39  ;;  %v2042_v9 = vpop.permute.xlu0 %534 }
 0x113   :  { %v460_v17 = vpop.permute.xlu1 %459 }
 0x115   :  { %v455_v15 = vpop.permute.xlu0 %454 }
 0x117   :  { %v2048_v23 = vpop.permute.xlu1 %549 }
 0x118   :  { %1522 = vmatmul.mubr.bf16.gmra.mrb[8].mxu1 %v1588_v40 }
 0x119   :  { %1525 = vmatprep.mubr.bf16.mxu1 %v1589_v41  ;;  %v2046_v21 = vpop.permute.xlu0 %544 }
 0x11b   :  { %v470_v30 = vpop.permute.xlu1 %469 }
 0x11d   :  { %v465_v26 = vpop.permute.xlu0 %464 }
 0x11f   :  { %v2052_v37 = vpop.permute.xlu1 %559 }
 0x120   :  { %1526 = vmatmul.mubr.bf16.gmra.mrb[12].mxu1 %v1590_v42 }
 0x121   :  { %1529 = vmatprep.mubr.bf16.mxu1 %v1591_v43  ;;  %v2050_v36 = vpop.permute.xlu0 %554 }
 0x128   :  { %1530 = vmatmul.mubr.bf16.gmra.mrb[16].mxu1 %v1592_v44 }
 0x129   :  { %1533 = vmatprep.mubr.bf16.mxu1 %v1593_v45  ;;  %v475_v45 = vpop.permute.xlu0 %474 }
 0x130   :  { %1534 = vmatmul.mubr.bf16.gmra.mrb[20].mxu1 %v1594_v46 }
 0x131   :  { %1537 = vmatprep.mubr.bf16.mxu1 %v1595_v47  ;;  %v1692_v47 = vmov 1  }
 0x132   :  { %1572 = vset.pattern.permute.xlu1 %v1692_v47  ;;  %1571 = vset.pattern.permute.xlu0 %v1692_v47 }
 0x133   :  { %1107 = vperm.xlu1 %1572, %v1762_v4   ;;  %1103 = vperm.xlu0 %1571, %v1748_v1   ;;  %v2070_v1 = vpop.permute.xlu0 %564 }
 0x137   :  { %1111 = vperm.xlu1 %1572, %v1757_v3   ;;  %1115 = vperm.xlu0 %1571, %v1771_v6  }
 0x138   :  { %1538 = vmatmul.mubr.bf16.gmra.mrb[24].mxu1 %v1596_v48 }
 0x139   :  { %1541 = vmatprep.mubr.bf16.mxu1 %v1597_v49 }
 0x13b   :  { %1119 = vperm.xlu1 %1572, %v1781_v8   ;;  %1123 = vperm.xlu0 %1571, %v1790_v10  }
 0x13f   :  { %1127 = vperm.xlu1 %1572, %v1800_v12   ;;  %1131 = vperm.xlu0 %1571, %v1806_v13  }
 0x140   :  { %1542 = vmatmul.mubr.bf16.gmra.mrb[28].mxu1 %v1598_v50  ;;  %v480_v50 = vpop.permute.xlu1 %479 }
 0x143   :  { %1135 = vperm.xlu1 %1572, %v1814_v14   ;;  %1139 = vperm.xlu0 %1571, %v1822_v16  }
 0x147   :  { %1143 = vperm.xlu1 %1572, %v1832_v18   ;;  %1147 = vperm.xlu0 %1571, %v1838_v19  }
 0x14b   :  { %1151 = vperm.xlu1 %1572, %v1846_v20   ;;  %1155 = vperm.xlu0 %1571, %v1854_v22  }
 0x14f   :  { %1159 = vperm.xlu1 %1572, %v1864_v24   ;;  %1163 = vperm.xlu0 %1571, %v1870_v25  }
 0x1db   :  { %v1515_v27 = vpop.f32.mrb[0].mxu1 }
 0x1dc   :  { %v711_v28 = vadd.f32 %v1515_v27, %v425_v57  ;;  %v702_v29 = vpop.f32.mrb[1].mxu1 }
 0x1dd   :  { %v703_v31 = vadd.f32 %v702_v29, %v415_v53  ;;  %v1516_v32 = vpop.f32.mrb[2].mxu1 }
 0x1de   :  { %1623 = vtanh.f32 %v711_v28  ;;  %v714_v33 = vadd.f32 %v1516_v32, %v430_v59  ;;  %v705_v34 = vpop.f32.mrb[3].mxu1  ;;  %v2072_v28 = vpop.permute.xlu1 %569 }
 0x1df   :  { %1625 = vtanh.f32 %v703_v31  ;;  %v706_v35 = vadd.f32 %v705_v34, %v420_v54 }
 0x1e0   :  { %1627 = vtanh.f32 %v714_v33 }
 0x1e1   :  { %1629 = vtanh.f32 %v706_v35 }
 0x1e2   :  { %v490_v8 = vpop.permute.xlu1 %489 }
 0x1e3   :  { %v1519_v38 = vpop.f32.mrb[4].mxu1 }
 0x1e4   :  { %v727_v39 = vadd.f32 %v1519_v38, %v445_v5  ;;  %v718_v40 = vpop.f32.mrb[5].mxu1 }
 0x1e5   :  { %v719_v41 = vadd.f32 %v718_v40, %v435_v62  ;;  %v1520_v42 = vpop.f32.mrb[6].mxu1 }
 0x1e6   :  { %1631 = vtanh.f32 %v727_v39  ;;  %v730_v43 = vadd.f32 %v1520_v42, %v450_v7  ;;  %v721_v44 = vpop.f32.mrb[7].mxu1 }
 0x1e7   :  { %1633 = vtanh.f32 %v719_v41  ;;  %v722_v46 = vadd.f32 %v721_v44, %v440_v63 }
 0x1e8   :  { %v2054_v48 = vpop.eup %1623  ;;  %1635 = vtanh.f32 %v730_v43 }
 0x1e9   :  { %v2058_v49 = vpop.eup %1625  ;;  %1637 = vtanh.f32 %v722_v46 }
 0x1ea   :  { %v2060_v53 = vpop.eup %1627 }
 0x1eb   :  { %v2062_v54 = vpop.eup %1629  ;;  %v1523_v57 = vpop.f32.mrb[8].mxu1  ;;  %v878_v58 = vpack.c.bf16 %v2060_v53, %v2054_v48 }
 0x1ec   :  { %v743_v59 = vadd.f32 %v1523_v57, %v465_v26  ;;  %v734_v62 = vpop.f32.mrb[9].mxu1  ;;  %v877_v63 = vpack.c.bf16 %v2062_v54, %v2058_v49 }
 0x1ed   :  { %v735_v4 = vadd.f32 %v734_v62, %v455_v15  ;;  %v1524_v5 = vpop.f32.mrb[10].mxu1 }
 0x1ee   :  { %1639 = vtanh.f32 %v743_v59  ;;  %v746_v7 = vadd.f32 %v1524_v5, %v470_v30  ;;  %v737_v27 = vpop.f32.mrb[11].mxu1  ;;  %v485_v30 = vpop.permute.xlu0 %484 }
 0x1ef   :  { %1641 = vtanh.f32 %v735_v4  ;;  %v738_v29 = vadd.f32 %v737_v27, %v460_v17 }
 0x1f0   :  { %v2074_v26 = vpop.eup %1631  ;;  %1643 = vtanh.f32 %v746_v7 }
 0x1f1   :  { %v2078_v3 = vpop.eup %1633  ;;  %1645 = vtanh.f32 %v738_v29 }
 0x1f2   :  { %v2080_v6 = vpop.eup %1635 }
 0x1f3   :  { %v2082_v15 = vpop.eup %1637  ;;  %v1527_v31 = vpop.f32.mrb[12].mxu1  ;;  %v880_v32 = vpack.c.bf16 %v2080_v6, %v2074_v26  ;;  %v1599_v26 = vld [vmem:[%s2254_s4] ss:$8 sps:$4 sm:$0xff]   ;;  %v1602_v6 = vld [vmem:[%s2254_s4 + $0x14] ss:$8 sps:$4 sm:$0xff]  }
 0x1f4   :  { %v759_v17 = vadd.f32 %v1527_v31, %v485_v30  ;;  %v750_v33 = vpop.f32.mrb[13].mxu1  ;;  %v879_v34 = vpack.c.bf16 %v2082_v15, %v2078_v3 }
 0x1f5   :  { %v751_v10 = vadd.f32 %v750_v33, %v475_v45  ;;  %v1528_v35 = vpop.f32.mrb[14].mxu1 }
 0x1f6   :  { %1647 = vtanh.f32 %v759_v17  ;;  %v762_v38 = vadd.f32 %v1528_v35, %v490_v8  ;;  %v753_v39 = vpop.f32.mrb[15].mxu1 }
 0x1f7   :  { %1649 = vtanh.f32 %v751_v10  ;;  %v754_v40 = vadd.f32 %v753_v39, %v480_v50 }
 0x1f8   :  { %v2090_v41 = vpop.eup %1639  ;;  %1651 = vtanh.f32 %v762_v38 }
 0x1f9   :  { %v2094_v42 = vpop.eup %1641  ;;  %1653 = vtanh.f32 %v754_v40 }
 0x1fa   :  { %v2096_v12 = vpop.eup %1643 }
 0x1fb   :  { %v2098_v13 = vpop.eup %1645  ;;  %v1531_v43 = vpop.f32.mrb[16].mxu1  ;;  %v882_v44 = vpack.c.bf16 %v2096_v12, %v2090_v41  ;;  %v1605_v41 = vld [vmem:[%s2254_s4 + $0x24] ss:$8 sps:$4 sm:$0xff]   ;;  %v1608_v12 = vld [vmem:[%s2254_s4 + $0x34] ss:$8 sps:$4 sm:$0xff]  }
 0x1fc   :  { %v775_v45 = vadd.f32 %v1531_v43, %v2027_v55  ;;  %v766_v46 = vpop.f32.mrb[17].mxu1  ;;  %v881_v47 = vpack.c.bf16 %v2098_v13, %v2094_v42  ;;  %v1607_v42 = vld [vmem:[%s2254_s4 + $0x20] ss:$8 sps:$4 sm:$0xff]   ;;  %v1610_v13 = vld [vmem:[%s2254_s4 + $0x30] ss:$8 sps:$4 sm:$0xff]  }
 0x1fd   :  { %v767_v14 = vadd.f32 %v766_v46, %v2023_v51  ;;  %v1532_v16 = vpop.f32.mrb[18].mxu1 }
 0x1fe   :  { %1655 = vtanh.f32 %v775_v45  ;;  %v778_v50 = vadd.f32 %v1532_v16, %v2029_v56  ;;  %v769_v57 = vpop.f32.mrb[19].mxu1 }
 0x1ff   :  { %1657 = vtanh.f32 %v767_v14  ;;  %v770_v59 = vadd.f32 %v769_v57, %v2025_v52 }
 0x200   :  { %v2110_v62 = vpop.eup %1647  ;;  %1659 = vtanh.f32 %v778_v50 }
 0x201   :  { %v2114_v18 = vpop.eup %1649  ;;  %1661 = vtanh.f32 %v770_v59  ;;  %v1614_v59 = vld [vmem:[%s2254_s4 + $0x54] ss:$8 sps:$4 sm:$0xff]  }
 0x202   :  { %v2116_v19 = vpop.eup %1651 }
 0x203   :  { %v2118_v51 = vpop.eup %1653  ;;  %v1535_v55 = vpop.f32.mrb[20].mxu1  ;;  %v884_v56 = vpack.c.bf16 %v2116_v19, %v2110_v62  ;;  %v1616_v62 = vld [vmem:[%s2254_s4 + $0x50] ss:$8 sps:$4 sm:$0xff]   ;;  %v1619_v19 = vld [vmem:[%s2254_s4 + $0x60] ss:$8 sps:$4 sm:$0xff]  }
 0x204   :  { %v791_v52 = vadd.f32 %v1535_v55, %v2038_v0  ;;  %v782_v4 = vpop.f32.mrb[21].mxu1  ;;  %v883_v5 = vpack.c.bf16 %v2118_v51, %v2114_v18  ;;  %v1617_v18 = vld [vmem:[%s2254_s4 + $0x64] ss:$8 sps:$4 sm:$0xff]   ;;  %v1620_v51 = vld [vmem:[%s2254_s4 + $0x74] ss:$8 sps:$4 sm:$0xff]  }
 0x205   :  { %v783_v20 = vadd.f32 %v782_v4, %v2034_v60  ;;  %v1536_v22 = vpop.f32.mrb[22].mxu1  ;;  %v1622_v55 = vld [vmem:[%s2254_s4 + $0x70] ss:$8 sps:$4 sm:$0xff]  }
 0x206   :  { %1663 = vtanh.f32 %v791_v52  ;;  %v794_v7 = vadd.f32 %v1536_v22, %v2040_v2  ;;  %v785_v27 = vpop.f32.mrb[23].mxu1  ;;  %v1332_v52 = vld [vmem:[%s2255_s1] sm:$0xff]  }
 0x207   :  { %1665 = vtanh.f32 %v783_v20  ;;  %v786_v29 = vadd.f32 %v785_v27, %v2036_v61  ;;  %v1334_v27 = vunpack.c.h.bf16 %v1332_v52 }
 0x208   :  { %v1656_v30 = vpop.eup %1655  ;;  %1667 = vtanh.f32 %v794_v7 }
 0x209   :  { %v1658_v0 = vpop.eup %1657  ;;  %1669 = vtanh.f32 %v786_v29  ;;  %v1104_v29 = vpop.permute.xlu0 %1103 }
 0x20a   :  { %v1660_v31 = vpop.eup %1659 }
 0x20b   :  { %v1662_v17 = vpop.eup %1661  ;;  %v1539_v33 = vpop.f32.mrb[24].mxu1  ;;  %v886_v24 = vpack.c.bf16 %v1660_v31, %v1656_v30 }
 0x20c   :  { %v807_v25 = vadd.f32 %v1539_v33, %v2046_v21  ;;  %v798_v8 = vpop.f32.mrb[25].mxu1  ;;  %v885_v60 = vpack.c.bf16 %v1662_v17, %v1658_v0  ;;  %v1108_v17 = vpop.permute.xlu1 %1107  ;;  %v1363_v33 = vld [vmem:[%s2255_s1 + $0x8] sm:$0xff]  }
 0x20d   :  { %v799_v10 = vadd.f32 %v798_v8, %v2042_v9  ;;  %v1540_v35 = vpop.f32.mrb[26].mxu1 }
 0x20e   :  { %1671 = vtanh.f32 %v807_v25  ;;  %v810_v2 = vadd.f32 %v1540_v35, %v2048_v23  ;;  %v801_v38 = vpop.f32.mrb[27].mxu1  ;;  %1404 = vmatprep.subr.bf16.mxu0 %v885_v60  ;;  %v1337_v35 = vunpack.c.l.bf16 %v1363_v33 }
 0x20f   :  { %1673 = vtanh.f32 %v799_v10  ;;  %v802_v61 = vadd.f32 %v801_v38, %v2044_v11  ;;  %1405 = vmatpush3.bf16.msra.mxu0 %v877_v63 }
 0x210   :  { %v1664_v39 = vpop.eup %1663  ;;  %1675 = vtanh.f32 %v810_v2  ;;  %1406 = vmatprep.subr.bf16.mxu0 %v886_v24 }
 0x211   :  { %v1666_v21 = vpop.eup %1665  ;;  %1677 = vtanh.f32 %v802_v61 }
 0x212   :  { %v1668_v40 = vpop.eup %1667 }
 0x213   :  { %v1670_v9 = vpop.eup %1669  ;;  %v1543_v43 = vpop.f32.mrb[28].mxu1  ;;  %1407 = vmatpush3.bf16.msra.mxu0 %v878_v58  ;;  %v888_v23 = vpack.c.bf16 %v1668_v40, %v1664_v39 }
 0x214   :  { %v823_v45 = vadd.f32 %v1543_v43, %v2070_v1  ;;  %v814_v11 = vpop.f32.mrb[29].mxu1  ;;  %v887_v46 = vpack.c.bf16 %v1670_v9, %v1666_v21  ;;  %v1338_v21 = vunpack.c.h.bf16 %v1363_v33 }
 0x215   :  { %v815_v49 = vadd.f32 %v814_v11, %v2050_v36  ;;  %v1544_v54 = vpop.f32.mrb[30].mxu1  ;;  %v1112_v11 = vpop.permute.xlu1 %1111 }
 0x216   :  { %1679 = vtanh.f32 %v823_v45  ;;  %v826_v63 = vadd.f32 %v1544_v54, %v2072_v28  ;;  %v817_v14 = vpop.f32.mrb[31].mxu1  ;;  %1408 = vmatprep.subr.bf16.mxu0 %v887_v46  ;;  %v1364_v46 = vld [vmem:[%s2255_s1 + $0x10] sm:$0xff]  }
 0x217   :  { %1681 = vtanh.f32 %v815_v49  ;;  %v818_v16 = vadd.f32 %v817_v14, %v2052_v37  ;;  %1409 = vmatpush3.bf16.msra.mxu0 %v879_v34  ;;  %v1116_v14 = vpop.permute.xlu0 %1115 }
 0x218   :  { %v1672_v48 = vpop.eup %1671  ;;  %1683 = vtanh.f32 %v826_v63  ;;  %1410 = vmatprep.subr.bf16.mxu0 %v888_v23 }
 0x219   :  { %v1674_v53 = vpop.eup %1673  ;;  %1685 = vtanh.f32 %v818_v16 }
 0x21a   :  { %v1676_v58 = vpop.eup %1675 }
 0x21b   :  { %v1678_v36 = vpop.eup %1677  ;;  %1411 = vmatpush3.bf16.msra.mxu0 %v880_v32  ;;  %v890_v1 = vpack.c.bf16 %v1676_v58, %v1672_v48  ;;  %v1604_v32 = vld [vmem:[%s2254_s4 + $0x10] ss:$8 sps:$4 sm:$0xff]   ;;  %v1341_v58 = vunpack.c.l.bf16 %v1364_v46 }
 0x21c   :  { %v889_v28 = vpack.c.bf16 %v1678_v36, %v1674_v53 }
 0x21e   :  { %1412 = vmatprep.subr.bf16.mxu0 %v889_v28 }
 0x21f   :  { %1413 = vmatpush3.bf16.msra.mxu0 %v881_v47  ;;  %v1613_v47 = vld [vmem:[%s2254_s4 + $0x40] ss:$8 sps:$4 sm:$0xff]  }
 0x220   :  { %v1680_v37 = vpop.eup %1679  ;;  %1414 = vmatprep.subr.bf16.mxu0 %v890_v1 }
 0x221   :  { %v1682_v3 = vpop.eup %1681 }
 0x222   :  { %v1684_v15 = vpop.eup %1683 }
 0x223   :  { %v1686_v34 = vpop.eup %1685  ;;  %1415 = vmatpush3.bf16.msra.mxu0 %v882_v44  ;;  %v892_v50 = vpack.c.bf16 %v1684_v15, %v1680_v37  ;;  %v1611_v44 = vld [vmem:[%s2254_s4 + $0x44] ss:$8 sps:$4 sm:$0xff]  }
 0x224   :  { %v891_v57 = vpack.c.bf16 %v1686_v34, %v1682_v3  ;;  %v1342_v3 = vunpack.c.h.bf16 %v1364_v46 }
 0x226   :  { %1416 = vmatprep.subr.bf16.mxu0 %v891_v57 }
 0x227   :  { %1417 = vmatpush3.bf16.msra.mxu0 %v883_v5  ;;  %v1333_v5 = vunpack.c.l.bf16 %v1332_v52 }
 0x228   :  { %1418 = vmatprep.subr.bf16.mxu0 %v892_v50 }
 0x22b   :  { %1419 = vmatpush3.bf16.msra.mxu0 %v884_v56  ;;  %v1693_v56 = vmov 0.0  }
 0x22c   :  { %1545 = vmatprep.subr.bf16.mxu1 %v1693_v56  ;;  %1561 = vmatprep.mubr.msk.bf16.mxu1 %vm1694_vm1, %v1693_v56 }
 0x22e   :  { %1038 = vmatmul.mubr.bf16.vlgmr.msra.gmra.mrb[16].mxu0 %v1599_v26 }
 0x22f   :  { %1045 = vmatprep.mubr.bf16.mxu0 %v1602_v6  ;;  %v1120_v6 = vpop.permute.xlu1 %1119 }
 0x236   :  { %1046 = vmatmul.mubr.bf16.gmra.mrb[20].mxu0 %v1604_v32  ;;  %v1365_v32 = vld [vmem:[%s2255_s1 + $0x18] sm:$0xff]  }
 0x237   :  { %1053 = vmatprep.mubr.bf16.mxu0 %v1605_v41  ;;  %v1346_v52 = vunpack.c.h.bf16 %v1365_v32 }
 0x23e   :  { %1054 = vmatmul.mubr.bf16.gmra.mrb[24].mxu0 %v1607_v42 }
 0x23f   :  { %1061 = vmatprep.mubr.bf16.mxu0 %v1608_v12 }
 0x246   :  { %1062 = vmatmul.mubr.bf16.gmra.mrb[28].mxu0 %v1610_v13  ;;  %v1124_v13 = vpop.permute.xlu0 %1123 }
 0x247   :  { %1069 = vmatprep.mubr.bf16.mxu0 %v1611_v44 }
 0x24e   :  { %1070 = vmatmul.mubr.bf16.gmra.mrb[32].mxu0 %v1613_v47 }
 0x24f   :  { %1077 = vmatprep.mubr.bf16.mxu0 %v1614_v59 }
 0x256   :  { %1078 = vmatmul.mubr.bf16.gmra.mrb[36].mxu0 %v1616_v62  ;;  %v1345_v62 = vunpack.c.l.bf16 %v1365_v32 }
 0x257   :  { %1085 = vmatprep.mubr.bf16.mxu0 %v1617_v18 }
 0x25e   :  { %1086 = vmatmul.mubr.bf16.gmra.mrb[40].mxu0 %v1619_v19 }
 0x25f   :  { %1093 = vmatprep.mubr.bf16.mxu0 %v1620_v51 }
 0x266   :  { %1094 = vmatmul.mubr.bf16.gmra.mrb[44].mxu0 %v1622_v55 }
 0x301   :  { %v1420_v4 = vpop.f32.mrb[16].mxu0 }
 0x302   :  { %v1421_v20 = vpop.f32.mrb[17].mxu0 }
 0x303   :  { %v1422_v22 = vadd.f32 %v1421_v20, %v1420_v4  ;;  %v1423_v7 = vpop.f32.mrb[18].mxu0 }
 0x304   :  { %v1424_v30 = vpop.f32.mrb[19].mxu0 }
 0x305   :  { %v1040_v0 = vadd.f32 %v1422_v22, %v1333_v5  ;;  %v1425_v31 = vadd.f32 %v1424_v30, %v1423_v7 }
 0x307   :  { %v1166_v24 = vadd.f32 %v1104_v29, %v1040_v0  ;;  %v1043_v25 = vadd.f32 %v1425_v31, %v1334_v27  ;;  %v1128_v27 = vpop.permute.xlu1 %1127  ;;  %v1366_v29 = vld [vmem:[%s2255_s1 + $0x20] sm:$0xff]  }
 0x309   :  { %v1182_v8 = vmul.f32 0.2, %v1166_v24  ;;  %v1167_v60 = vadd.f32 %v1108_v17, %v1043_v25  ;;  %v1426_v10 = vpop.f32.mrb[20].mxu0  ;;  %v1132_v17 = vpop.permute.xlu0 %1131 }
 0x30a   :  { %v1427_v2 = vpop.f32.mrb[21].mxu0 }
 0x30b   :  { %v1183_v38 = vmul.f32 0.2, %v1167_v60  ;;  %v1428_v61 = vadd.f32 %v1427_v2, %v1426_v10  ;;  %v1429_v39 = vpop.f32.mrb[22].mxu0  ;;  %v1198_v9 = vmax.f32 %v1166_v24, %v1182_v8  ;;  %v1349_v8 = vunpack.c.l.bf16 %v1366_v29 }
 0x30c   :  { %v1430_v40 = vpop.f32.mrb[23].mxu0 }
 0x30d   :  { %v1199_v43 = vmax.f32 %v1167_v60, %v1183_v38  ;;  %v1048_v23 = vadd.f32 %v1428_v61, %v1337_v35  ;;  %v1431_v45 = vadd.f32 %v1430_v40, %v1429_v39  ;;  %v1350_v38 = vunpack.c.h.bf16 %v1366_v29 }
 0x30f   :  { %v1168_v49 = vadd.f32 %v1112_v11, %v1048_v23  ;;  %v1051_v54 = vadd.f32 %v1431_v45, %v1338_v21  ;;  %v1215_v63 = vpack.c.bf16 %v1199_v43, %v1198_v9  ;;  %v1136_v43 = vpop.permute.xlu1 %1135  ;;  %v1367_v23 = vld [vmem:[%s2255_s1 + $0x28] sm:$0xff]  }
 0x311   :  { %v1184_v16 = vmul.f32 0.2, %v1168_v49  ;;  %v1169_v48 = vadd.f32 %v1116_v14, %v1051_v54  ;;  %v1432_v53 = vpop.f32.mrb[24].mxu0  ;;  %1546 = vmatpush3.bf16.msra.mxu1 %v1215_v63 }
 0x312   :  { %v1433_v36 = vpop.f32.mrb[25].mxu0  ;;  %1547 = vmatprep.subr.bf16.mxu1 %v1693_v56 }
 0x313   :  { %v1185_v1 = vmul.f32 0.2, %v1169_v48  ;;  %v1434_v28 = vadd.f32 %v1433_v36, %v1432_v53  ;;  %v1435_v37 = vpop.f32.mrb[26].mxu0  ;;  %v1200_v34 = vmax.f32 %v1168_v49, %v1184_v16  ;;  %v1140_v49 = vpop.permute.xlu0 %1139  ;;  %v1353_v16 = vunpack.c.l.bf16 %v1367_v23 }
 0x314   :  { %v1436_v15 = vpop.f32.mrb[27].mxu0 }
 0x315   :  { %v1201_v50 = vmax.f32 %v1169_v48, %v1185_v1  ;;  %v1056_v57 = vadd.f32 %v1434_v28, %v1341_v58  ;;  %v1437_v26 = vadd.f32 %v1436_v15, %v1435_v37  ;;  %v1354_v1 = vunpack.c.h.bf16 %v1367_v23 }
 0x317   :  { %v1170_v41 = vadd.f32 %v1120_v6, %v1056_v57  ;;  %v1059_v42 = vadd.f32 %v1437_v26, %v1342_v3  ;;  %v1216_v12 = vpack.c.bf16 %v1201_v50, %v1200_v34  ;;  %v1144_v50 = vpop.permute.xlu1 %1143  ;;  %v1368_v57 = vld [vmem:[%s2255_s1 + $0x30] sm:$0xff]  }
 0x319   :  { %v1186_v44 = vmul.f32 0.2, %v1170_v41  ;;  %v1171_v47 = vadd.f32 %v1124_v13, %v1059_v42  ;;  %v1438_v59 = vpop.f32.mrb[28].mxu0  ;;  %1548 = vmatpush3.bf16.msra.mxu1 %v1216_v12 }
 0x31a   :  { %v1439_v18 = vpop.f32.mrb[29].mxu0  ;;  %1549 = vmatprep.subr.bf16.mxu1 %v1693_v56 }
 0x31b   :  { %v1187_v19 = vmul.f32 0.2, %v1171_v47  ;;  %v1440_v51 = vadd.f32 %v1439_v18, %v1438_v59  ;;  %v1441_v55 = vpop.f32.mrb[30].mxu0  ;;  %v1202_v5 = vmax.f32 %v1170_v41, %v1186_v44  ;;  %v1148_v41 = vpop.permute.xlu0 %1147  ;;  %v1357_v44 = vunpack.c.l.bf16 %v1368_v57 }
 0x31c   :  { %v1442_v4 = vpop.f32.mrb[31].mxu0 }
 0x31d   :  { %v1203_v20 = vmax.f32 %v1171_v47, %v1187_v19  ;;  %v1064_v22 = vadd.f32 %v1440_v51, %v1345_v62  ;;  %v1443_v7 = vadd.f32 %v1442_v4, %v1441_v55  ;;  %v1358_v19 = vunpack.c.h.bf16 %v1368_v57 }
 0x31f   :  { %v1172_v30 = vadd.f32 %v1128_v27, %v1064_v22  ;;  %v1067_v0 = vadd.f32 %v1443_v7, %v1346_v52  ;;  %v1217_v31 = vpack.c.bf16 %v1203_v20, %v1202_v5  ;;  %v1152_v20 = vpop.permute.xlu1 %1151  ;;  %v1369_v22 = vld [vmem:[%s2255_s1 + $0x38] sm:$0xff]  }
 0x321   :  { %v1188_v33 = vmul.f32 0.2, %v1172_v30  ;;  %v1173_v24 = vadd.f32 %v1132_v17, %v1067_v0  ;;  %v1444_v25 = vpop.f32.mrb[32].mxu0  ;;  %1550 = vmatpush3.bf16.msra.mxu1 %v1217_v31 }
 0x322   :  { %v1445_v60 = vpop.f32.mrb[33].mxu0  ;;  %1551 = vmatprep.subr.bf16.mxu1 %v1693_v56 }
 0x323   :  { %v1189_v10 = vmul.f32 0.2, %v1173_v24  ;;  %v1446_v35 = vadd.f32 %v1445_v60, %v1444_v25  ;;  %v1447_v2 = vpop.f32.mrb[34].mxu0  ;;  %v1204_v39 = vmax.f32 %v1172_v30, %v1188_v33  ;;  %v1156_v30 = vpop.permute.xlu0 %1155  ;;  %v1361_v33 = vunpack.c.l.bf16 %v1369_v22 }
 0x324   :  { %v1448_v61 = vpop.f32.mrb[35].mxu0 }
 0x325   :  { %v1205_v21 = vmax.f32 %v1173_v24, %v1189_v10  ;;  %v1072_v40 = vadd.f32 %v1446_v35, %v1349_v8  ;;  %v1449_v9 = vadd.f32 %v1448_v61, %v1447_v2  ;;  %v1362_v10 = vunpack.c.h.bf16 %v1369_v22 }
 0x327   :  { %v1174_v45 = vadd.f32 %v1136_v43, %v1072_v40  ;;  %v1075_v11 = vadd.f32 %v1449_v9, %v1350_v38  ;;  %v1218_v46 = vpack.c.bf16 %v1205_v21, %v1204_v39  ;;  %v1160_v21 = vpop.permute.xlu1 %1159  ;;  %v1164_v23 = vpop.permute.xlu0 %1163 }
 0x329   :  { %v1190_v54 = vmul.f32 0.2, %v1174_v45  ;;  %v1175_v63 = vadd.f32 %v1140_v49, %v1075_v11  ;;  %v1450_v14 = vpop.f32.mrb[36].mxu0  ;;  %1552 = vmatpush3.bf16.msra.mxu1 %v1218_v46 }
 0x32a   :  { %v1451_v48 = vpop.f32.mrb[37].mxu0  ;;  %1553 = vmatprep.subr.bf16.mxu1 %v1693_v56 }
 0x32b   :  { %v1191_v53 = vmul.f32 0.2, %v1175_v63  ;;  %v1452_v58 = vadd.f32 %v1451_v48, %v1450_v14  ;;  %v1453_v36 = vpop.f32.mrb[38].mxu0  ;;  %v1206_v37 = vmax.f32 %v1174_v45, %v1190_v54  ;;  %v1214_v14 = vld [vmem:[%s2256_s7] sm:$0x1] }
 0x32c   :  { %v1454_v28 = vpop.f32.mrb[39].mxu0 }
 0x32d   :  { %v1207_v3 = vmax.f32 %v1175_v63, %v1191_v53  ;;  %v1080_v15 = vadd.f32 %v1452_v58, %v1353_v16  ;;  %v1455_v34 = vadd.f32 %v1454_v28, %v1453_v36  ;;  %v1224_v16 = vstv %s2257_s8 }
 0x32f   :  { %v1176_v26 = vadd.f32 %v1144_v50, %v1080_v15  ;;  %v1083_v6 = vadd.f32 %v1455_v34, %v1354_v1  ;;  %v1219_v32 = vpack.c.bf16 %v1207_v3, %v1206_v37 }
 0x331   :  { %v1192_v42 = vmul.f32 0.2, %v1176_v26  ;;  %v1177_v12 = vadd.f32 %v1148_v41, %v1083_v6  ;;  %v1456_v13 = vpop.f32.mrb[40].mxu0  ;;  %1554 = vmatpush3.bf16.msra.mxu1 %v1219_v32 }
 0x332   :  { %v1457_v47 = vpop.f32.mrb[41].mxu0  ;;  %1555 = vmatprep.subr.bf16.mxu1 %v1693_v56 }
 0x333   :  { %v1193_v59 = vmul.f32 0.2, %v1177_v12  ;;  %v1458_v62 = vadd.f32 %v1457_v47, %v1456_v13  ;;  %v1459_v18 = vpop.f32.mrb[42].mxu0  ;;  %v1208_v55 = vmax.f32 %v1176_v26, %v1192_v42 }
 0x334   :  { %v1460_v51 = vpop.f32.mrb[43].mxu0 }
 0x335   :  { %v1209_v52 = vmax.f32 %v1177_v12, %v1193_v59  ;;  %v1088_v4 = vadd.f32 %v1458_v62, %v1357_v44  ;;  %v1461_v5 = vadd.f32 %v1460_v51, %v1459_v18 }
 0x337   :  { %v1178_v7 = vadd.f32 %v1152_v20, %v1088_v4  ;;  %v1091_v27 = vadd.f32 %v1461_v5, %v1358_v19  ;;  %v1220_v29 = vpack.c.bf16 %v1209_v52, %v1208_v55 }
 0x339   :  { %v1194_v0 = vmul.f32 0.2, %v1178_v7  ;;  %v1179_v31 = vadd.f32 %v1156_v30, %v1091_v27  ;;  %v1462_v17 = vpop.f32.mrb[44].mxu0  ;;  %1556 = vmatpush3.bf16.msra.mxu1 %v1220_v29 }
 0x33a   :  { %v1463_v24 = vpop.f32.mrb[45].mxu0  ;;  %1557 = vmatprep.subr.bf16.mxu1 %v1693_v56 }
 0x33b   :  { %v1195_v25 = vmul.f32 0.2, %v1179_v31  ;;  %v1464_v8 = vadd.f32 %v1463_v24, %v1462_v17  ;;  %v1465_v60 = vpop.f32.mrb[46].mxu0  ;;  %v1210_v2 = vmax.f32 %v1178_v7, %v1194_v0 }
 0x33c   :  { %v1466_v35 = vpop.f32.mrb[47].mxu0 }
 0x33d   :  { %v1211_v38 = vmax.f32 %v1179_v31, %v1195_v25  ;;  %v1096_v61 = vadd.f32 %v1464_v8, %v1361_v33  ;;  %v1467_v39 = vadd.f32 %v1466_v35, %v1465_v60 }
 0x33f   :  { %v1180_v40 = vadd.f32 %v1160_v21, %v1096_v61  ;;  %v1099_v9 = vadd.f32 %v1467_v39, %v1362_v10  ;;  %v1221_v43 = vpack.c.bf16 %v1211_v38, %v1210_v2 }
 0x341   :  { %v1196_v45 = vmul.f32 0.2, %v1180_v40  ;;  %v1181_v11 = vadd.f32 %v1164_v23, %v1099_v9  ;;  %1558 = vmatpush3.bf16.msra.mxu1 %v1221_v43 }
 0x342   :  { %1559 = vmatprep.subr.bf16.mxu1 %v1693_v56 }
 0x343   :  { %v1197_v46 = vmul.f32 0.2, %v1181_v11  ;;  %v1212_v49 = vmax.f32 %v1180_v40, %v1196_v45 }
 0x345   :  { %v1213_v54 = vmax.f32 %v1181_v11, %v1197_v46 }
 0x347   :  { %v1222_v63 = vpack.c.bf16 %v1213_v54, %v1212_v49 }
 0x349   :  { %1560 = vmatpush3.bf16.msra.mxu1 %v1222_v63 }
 0x34c   :  { %1562 = vmatmul.mubr.bf16.vlgmr.msra.gmra.mrb[32].mxu1 %v1214_v14 }
 0x41f   :  { %v1259_v48 = vpop.f32.mrb[32].mxu1 }
 0x420   :  { %v1260_v53 = vadd.f32 %v1259_v48, %v1224_v16  ;;  %v1563_v58 = vpop.f32.mrb[33].mxu1 }
 0x421   :  { %v1262_v36 = vpop.f32.mrb[34].mxu1 }
 0x422   :  { %v1265_v1 = vand.u32 2147483647, %v1260_v53  ;;  %v1564_v56 = vpop.f32.mrb[35].mxu1  ;;  %vm1269_vm3 = vcmp.ge.f32.partialorder %v1260_v53, 0.0 }
 0x424   :  { %v1266_v28 = vsub.f32 0.0, %v1265_v1 }
 0x426   :  { %v1267_v37 = vmul.f32 1.442695, %v1266_v28 }
 0x428   :  { %1687 = vpow2.f32 %v1267_v37 }
 0x432   :  { %v1688_v3 = vpop.eup %1687 }
 0x433   :  { %v1270_v15 = vadd.f32 1.0, %v1688_v3 }
 0x435   :  { %1689 = vrcp.f32 %v1270_v15 }
 0x43f   :  { %v1690_v34 = vpop.eup %1689 }
 0x440   :  { %v1273_v50 = vmul.f32 %v1690_v34, %v1688_v3 }
 0x442   :  { %v1274_v57 = vsel %vm1269_vm3, %v1690_v34, %v1273_v50 }
 0x443   :  { %1276 = vst.msk [vmem:[%s2258_s9] sm:$0x1] %vm1275_vm2, %v1274_v57 }

</bundles_post_ra>
